<compile_context>
chip_gen: v7x
topology: tpu7x:2x2x1
jax: 0.10.0
libtpu: 0.0.40
codegen_flags: <defaults>
</compile_context>

<pallas_src>
import functools

import jax
import jax.numpy as jnp
from jax.experimental import pallas as pl
from jax.experimental.pallas import tpu as pltpu

# Sublane alignment for the batch dim; 16 keeps the bf16 output tile packed.
_BATCH_ALIGN = 16


def _round_up(n: int, m: int) -> int:
    return ((n + m - 1) // m) * m


# --------------------------------------------------------------------------- #
# Kernel
# --------------------------------------------------------------------------- #
def decoder_kernel(x_ref, nx_ref, w1_ref, b1_ref, w2_ref, b2_ref, o_ref):
    # fc1: lane-concat the two latent halves (XLU shifts, no extra MXU push),
    # single K = 2*latent matmul in bf16 with f32 accumulation.
    xcat = jnp.concatenate([x_ref[...], nx_ref[...]], axis=-1)      # (tb, 2L) f32
    h = jnp.dot(xcat.astype(jnp.bfloat16), w1_ref[...],
                preferred_element_type=jnp.float32)
    h = jnp.maximum(h + b1_ref[...], 0.0)                           # f32 bias+ReLU

    # fc2 (+ ReLU) onto a lane-dense (multiple-of-128) padded output tile,
    # stored in bf16 to halve the HBM writeback.
    y = jnp.dot(h.astype(jnp.bfloat16), w2_ref[...],
                preferred_element_type=jnp.float32)
    o_ref[...] = jnp.maximum(y + b2_ref[...], 0.0).astype(o_ref.dtype)


# --------------------------------------------------------------------------- #
# One-time parameter layout prep (hoisted out of the per-call path)
# --------------------------------------------------------------------------- #
def prepare_decoder_params(w1, b1, w2, b2):
    """Cast/lay-out parameters once. Weights stored (in, out).

    Returns (w1_bf16, b1_f32, w2_padded_bf16, b2_padded_f32); fc2 arrays are
    zero-padded on the output axis to a multiple of 128 lanes.
    """
    hidden = w1.shape[1]
    action_dim = w2.shape[1]
    n_pad = _round_up(action_dim, 128)

    w1b = w1.astype(jnp.bfloat16)                                   # (2L, 512)
    b1f = b1.reshape(1, hidden).astype(jnp.float32)
    w2p = jnp.zeros((hidden, n_pad), jnp.bfloat16).at[:, :action_dim].set(
        w2.astype(jnp.bfloat16))
    b2p = jnp.zeros((1, n_pad), jnp.float32).at[:, :action_dim].set(
        b2.reshape(1, action_dim).astype(jnp.float32))
    return w1b, b1f, w2p, b2p


# --------------------------------------------------------------------------- #
# Forward
# --------------------------------------------------------------------------- #
@functools.partial(jax.jit,
                   static_argnames=("action_dim", "tile_b", "min_grid_steps"))
def decoder_forward(x, next_x, w1, b1, w2, b2, *, action_dim,
                    tile_b=1024, min_grid_steps=1):
    """Fused Decoder forward.

    x, next_x : (B, latent) f32
    w1        : (2*latent, 512) bf16, b1 : (1, 512) f32
    w2        : (512, n_pad)    bf16, b2 : (1, n_pad) f32   (lane-padded)
    Pass min_grid_steps=2 on v7x so the batch grid shards across its 2 TCs.
    Returns (B, action_dim) f32.
    """
    B, latent = x.shape
    hidden = w1.shape[1]
    n_pad = w2.shape[1]

    # Adaptive, balanced batch tiling (no near-tb dead-row padding).
    b_aln = _round_up(B, _BATCH_ALIGN)
    tb = min(tile_b, b_aln)
    n_tiles = max(min_grid_steps, pl.cdiv(b_aln, tb))
    tb = _round_up(pl.cdiv(b_aln, n_tiles), _BATCH_ALIGN)
    n_tiles = pl.cdiv(b_aln, tb)
    b_pad = n_tiles * tb

    if b_pad != B:
        pad = ((0, b_pad - B), (0, 0))
        x = jnp.pad(x, pad)
        next_x = jnp.pad(next_x, pad)

    flops = 2 * b_pad * (2 * latent * hidden + hidden * n_pad)
    bytes_accessed = (
        2 * b_pad * latent * 4                      # x, next_x (f32)
        + 2 * latent * hidden * 2 + hidden * 4      # w1 (bf16), b1 (f32)
        + hidden * n_pad * 2 + n_pad * 4            # w2 (bf16), b2 (f32)
        + b_pad * n_pad * 2                         # output (bf16)
    )

    batch_spec = lambda d: pl.BlockSpec((tb, d), lambda i: (i, 0))
    const_spec = lambda r, c: pl.BlockSpec((r, c), lambda i: (0, 0))

    out = pl.pallas_call(
        decoder_kernel,
        out_shape=jax.ShapeDtypeStruct((b_pad, n_pad), jnp.bfloat16),
        grid=(n_tiles,),
        in_specs=[
            batch_spec(latent),                  # x tile
            batch_spec(latent),                  # next_x tile
            const_spec(2 * latent, hidden),      # w1 (VMEM-resident)
            const_spec(1, hidden),               # b1
            const_spec(hidden, n_pad),           # w2 (lane-padded)
            const_spec(1, n_pad),                # b2 (lane-padded)
        ],
        out_specs=batch_spec(n_pad),
        compiler_params=pltpu.CompilerParams(
            dimension_semantics=("parallel",)),
        cost_estimate=pl.CostEstimate(
            flops=flops, transcendentals=0, bytes_accessed=bytes_accessed),
    )(x, next_x, w1, b1, w2, b2)

    # Slice off batch padding + lane padding; upcast the bf16 store to f32.
    return out[:B, :action_dim].astype(jnp.float32)


# --------------------------------------------------------------------------- #
# Synthetic params + pure-JAX reference
# --------------------------------------------------------------------------- #
def init_decoder_params(key, action_dim, latent_dim):
    """Deterministic synthetic parameters matching nn.Linear shapes.
    (Stored transposed vs. PyTorch: (in, out) instead of (out, in).)"""
    k1, k2, k3, k4 = jax.random.split(key, 4)
    in1 = 2 * latent_dim
    s1 = 1.0 / jnp.sqrt(in1)      # PyTorch default U(-1/sqrt(fan_in), ...)
    s2 = 1.0 / jnp.sqrt(512.0)
    w1 = jax.random.uniform(k1, (in1, 512), jnp.float32, -s1, s1)
    b1 = jax.random.uniform(k2, (1, 512), jnp.float32, -s1, s1)
    w2 = jax.random.uniform(k3, (512, action_dim), jnp.float32, -s2, s2)
    b2 = jax.random.uniform(k4, (1, action_dim), jnp.float32, -s2, s2)
    return w1, b1, w2, b2


def decoder_reference(x, next_x, w1, b1, w2, b2):
    xcat = jnp.concatenate([x, next_x], axis=1)
    h = jnp.maximum(xcat @ w1 + b1, 0.0)
    return jnp.maximum(h @ w2 + b2, 0.0)


if __name__ == "__main__":
    key = jax.random.PRNGKey(0)
    kx, knx, kp = jax.random.split(key, 3)

    batch = 8
    latent_dim = 32
    action_dim = 12  # SuperMarioBros COMPLEX_MOVEMENT has 12 actions

    x = jax.random.normal(kx, (batch, latent_dim), jnp.float32)
    next_x = jax.random.normal(knx, (batch, latent_dim), jnp.float32)
    w1, b1, w2, b2 = init_decoder_params(kp, action_dim, latent_dim)

    # One-time layout prep (outside the hot path).
    w1b, b1f, w2p, b2p = prepare_decoder_params(w1, b1, w2, b2)

    out = decoder_forward(x, next_x, w1b, b1f, w2p, b2p,
                          action_dim=action_dim)
    out = jax.block_until_ready(out)

    ref = decoder_reference(x, next_x, w1, b1, w2, b2)  # full-f32 reference
    assert out.shape == (batch, action_dim), out.shape
    assert out.dtype == jnp.float32
    # Matmuls run in bf16 on the MXU (f32 accumulation) and the store is bf16
    # -> bf16-level tolerance.
    assert jnp.allclose(out, ref, atol=3e-2, rtol=3e-2), float(
        jnp.max(jnp.abs(out - ref)))

    print("KERNEL_OK")
</pallas_src>

<mosaic_0001>
module attributes {stable_mosaic.version = 11 : i64} {
  func.func @decoder_kernel(%arg0: i32, %arg1: memref<16x32xf32, #tpu.memory_space<vmem>>, %arg2: memref<16x32xf32, #tpu.memory_space<vmem>>, %arg3: memref<64x512xbf16, #tpu.memory_space<vmem>>, %arg4: memref<1x512xf32, #tpu.memory_space<vmem>>, %arg5: memref<512x128xbf16, #tpu.memory_space<vmem>>, %arg6: memref<1x128xf32, #tpu.memory_space<vmem>>, %arg7: memref<16x128xbf16, #tpu.memory_space<vmem>>) attributes {dimension_semantics = [#tpu.dimension_semantics<parallel>], iteration_bounds = array<i64: 1>, scalar_prefetch = 0 : i64, scratch_operands = 0 : i64, tpu.core_type = #tpu.core_type<tc>, window_params = [{transform_indices = @transform_0, window_bounds = array<i64: 16, 32>}, {transform_indices = @transform_1, window_bounds = array<i64: 16, 32>}, {pipeline_mode = #tpu.pipeline_mode<synchronous>, transform_indices = @transform_2, window_bounds = array<i64: 64, 512>}, {pipeline_mode = #tpu.pipeline_mode<synchronous>, transform_indices = @transform_3, window_bounds = array<i64: 1, 512>}, {pipeline_mode = #tpu.pipeline_mode<synchronous>, transform_indices = @transform_4, window_bounds = array<i64: 512, 128>}, {pipeline_mode = #tpu.pipeline_mode<synchronous>, transform_indices = @transform_5, window_bounds = array<i64: 1, 128>}, {transform_indices = @transform_6, window_bounds = array<i64: 16, 128>}]} {
    %c0 = arith.constant 0 : index
    %c0_0 = arith.constant 0 : index
    %0 = vector.load %arg1[%c0, %c0_0] : memref<16x32xf32, #tpu.memory_space<vmem>>, vector<16x32xf32>
    %c0_1 = arith.constant 0 : index
    %c0_2 = arith.constant 0 : index
    %1 = vector.load %arg2[%c0_1, %c0_2] : memref<16x32xf32, #tpu.memory_space<vmem>>, vector<16x32xf32>
    %2 = tpu.concatenate %0, %1 in 1 : vector<16x32xf32>, vector<16x32xf32> -> vector<16x64xf32>
    %3 = arith.truncf %2 : vector<16x64xf32> to vector<16x64xbf16>
    %c0_3 = arith.constant 0 : index
    %c0_4 = arith.constant 0 : index
    %4 = vector.load %arg3[%c0_3, %c0_4] : memref<64x512xbf16, #tpu.memory_space<vmem>>, vector<64x512xbf16>
    %cst = arith.constant dense<0.000000e+00> : vector<16x512xf32>
    %5 = tpu.matmul %3, %4, %cst {dimension_numbers = #tpu.dot_dimension_numbers<[1], [0], [0], [1], [0, 0, 1, 1], [], []>} : vector<16x64xbf16>, vector<64x512xbf16>, vector<16x512xf32> -> vector<16x512xf32>
    %c0_5 = arith.constant 0 : index
    %c0_6 = arith.constant 0 : index
    %6 = vector.load %arg4[%c0_5, %c0_6] : memref<1x512xf32, #tpu.memory_space<vmem>>, vector<1x512xf32>
    %7 = vector.broadcast %6 : vector<1x512xf32> to vector<16x512xf32>
    %8 = arith.addf %5, %7 : vector<16x512xf32>
    %cst_7 = arith.constant 0.000000e+00 : f32
    %9 = vector.broadcast %cst_7 : f32 to vector<16x512xf32>
    %10 = arith.maximumf %8, %9 : vector<16x512xf32>
    %11 = arith.truncf %10 : vector<16x512xf32> to vector<16x512xbf16>
    %c0_8 = arith.constant 0 : index
    %c0_9 = arith.constant 0 : index
    %12 = vector.load %arg5[%c0_8, %c0_9] : memref<512x128xbf16, #tpu.memory_space<vmem>>, vector<512x128xbf16>
    %cst_10 = arith.constant dense<0.000000e+00> : vector<16x128xf32>
    %13 = tpu.matmul %11, %12, %cst_10 {dimension_numbers = #tpu.dot_dimension_numbers<[1], [0], [0], [1], [0, 0, 1, 1], [], []>} : vector<16x512xbf16>, vector<512x128xbf16>, vector<16x128xf32> -> vector<16x128xf32>
    %c0_11 = arith.constant 0 : index
    %c0_12 = arith.constant 0 : index
    %14 = vector.load %arg6[%c0_11, %c0_12] : memref<1x128xf32, #tpu.memory_space<vmem>>, vector<1x128xf32>
    %15 = vector.broadcast %14 : vector<1x128xf32> to vector<16x128xf32>
    %16 = arith.addf %13, %15 : vector<16x128xf32>
    %cst_13 = arith.constant 0.000000e+00 : f32
    %17 = vector.broadcast %cst_13 : f32 to vector<16x128xf32>
    %18 = arith.maximumf %16, %17 : vector<16x128xf32>
    %19 = arith.truncf %18 : vector<16x128xf32> to vector<16x128xbf16>
    %c0_14 = arith.constant 0 : index
    %c0_15 = arith.constant 0 : index
    %20 = vector.load %arg7[%c0_14, %c0_15] : memref<16x128xbf16, #tpu.memory_space<vmem>>, vector<16x128xbf16>
    tpu.vector_store %arg7[%c0_14, %c0_15], %19 {strides = array<i32>} : memref<16x128xbf16, #tpu.memory_space<vmem>>, vector<16x128xbf16>,
    return
  }
  func.func @transform_0(%arg0: i32) -> (i32, i32) {
    %c0_i32 = arith.constant 0 : i32
    %c0_i32_0 = arith.constant 0 : i32
    return %arg0, %c0_i32 : i32, i32
  }
  func.func @transform_1(%arg0: i32) -> (i32, i32) {
    %c0_i32 = arith.constant 0 : i32
    %c0_i32_0 = arith.constant 0 : i32
    return %arg0, %c0_i32 : i32, i32
  }
  func.func @transform_2(%arg0: i32) -> (i32, i32) {
    %c0_i32 = arith.constant 0 : i32
    %c0_i32_0 = arith.constant 0 : i32
    %c0_i32_1 = arith.constant 0 : i32
    return %c0_i32, %c0_i32_0 : i32, i32
  }
  func.func @transform_3(%arg0: i32) -> (i32, i32) {
    %c0_i32 = arith.constant 0 : i32
    %c0_i32_0 = arith.constant 0 : i32
    %c0_i32_1 = arith.constant 0 : i32
    return %c0_i32, %c0_i32_0 : i32, i32
  }
  func.func @transform_4(%arg0: i32) -> (i32, i32) {
    %c0_i32 = arith.constant 0 : i32
    %c0_i32_0 = arith.constant 0 : i32
    %c0_i32_1 = arith.constant 0 : i32
    return %c0_i32, %c0_i32_0 : i32, i32
  }
  func.func @transform_5(%arg0: i32) -> (i32, i32) {
    %c0_i32 = arith.constant 0 : i32
    %c0_i32_0 = arith.constant 0 : i32
    %c0_i32_1 = arith.constant 0 : i32
    return %c0_i32, %c0_i32_0 : i32, i32
  }
  func.func @transform_6(%arg0: i32) -> (i32, i32) {
    %c0_i32 = arith.constant 0 : i32
    %c0_i32_0 = arith.constant 0 : i32
    return %arg0, %c0_i32 : i32, i32
  }
}

</mosaic_0001>

<bundles_post_ra>
// kernel: decoder_forward.1
= control target key start
LH: loop header
LB: loop body
LE: loop exit
PB: predicated region body
PF: predicated region fallthrough
CT: control target
= control target key end

     0   :  { %11 = vsyncpa [#allocation3], 0  ;;  %s960_s0 = inlined_call_operand.vmem [shape: f32[16,32], index: 0, kind: input, shape index: {}]   ;;  %s961_s1 = inlined_call_operand.vmem [shape: f32[16,32], index: 1, kind: input, shape index: {}]   ;;  %s962_s2 = inlined_call_operand.hbm [shape: bf16[64,512], index: 2, kind: input, shape index: {}]   ;;  %s963_s3 = inlined_call_operand.vmem [shape: f32[1,512], index: 3, kind: input, shape index: {}]   ;;  %s964_s4 = inlined_call_operand.hbm [shape: bf16[512,128], index: 4, kind: input, shape index: {}]   ;;  %s965_s5 = inlined_call_operand.vmem [shape: f32[1,128], index: 5, kind: input, shape index: {}]   ;;  %s966_s6 = inlined_call_operand.vmem [shape: bf16[16,128], index: 6, kind: output, shape index: {}]  }
   0x1   :  { %12 = vsyncpa [#allocation5], 0  ;;  %s872_s21 = smov [#allocation2]   ;;  %s824_s25 = scalar_lea.hbm %s962_s2, 2048 }
   0x2   :  { %s22_s22 = sshll.u32 %s872_s21, 4  ;;  %p825_p0 = scmp.ne.s32.totalorder %s962_s2, %s824_s25  ;;  %s23_s22 = int_to_ptr.vmem [resolvable:$true] %s22_s22 }
   0x3   :  { %p828_p1 = scmp.lt.u32.totalorder %s824_s25, %s962_s2 }
   0x5   :  { %p830_p2 = pnand %p828_p1, %p825_p0 }
   0x7   :  { %833 = shalt.err (!%p830_p2)
}
   0x8   :  { %s834_s30 = scalar_lea.vmem %s23_s22, 2048  ;;  %p839_p4 = scmp.lt.s32.totalorder %s23_s22, %s23_s22 }
   0x9   :  { %p835_p3 = scmp.ne.s32.totalorder %s23_s22, %s834_s30  ;;  %p840_p5 = scmp.lt.s32.totalorder %s834_s30, %s834_s30 }
   0xb   :  { %p841_p6 = por %p840_p5, %p839_p4 }
   0xd   :  { %p842_p7 = pnand %p841_p6, %p835_p3 }
   0xf   :  { %845 = shalt.err (!%p842_p7)
}
  0x10   :  { %s873_s7 = smov 256   ;;  %s874_s8 = smov 16  }
  0x11   :  { %28 = dma.hbm_to_vmem [thread:$0]  %s962_s2, 2048, %s23_s22, [#allocation3], %s873_s7, %s873_s7, %s874_s8  }
  0x12   :  { %s875_s11 = smov [#allocation4]   ;;  %s846_s15 = scalar_lea.hbm %s964_s4, 4096 }
  0x13   :  { %s36_s12 = sshll.u32 %s875_s11, 4  ;;  %p847_p8 = scmp.ne.s32.totalorder %s964_s4, %s846_s15  ;;  %s37_s12 = int_to_ptr.vmem [resolvable:$true] %s36_s12 }
  0x14   :  { %p850_p9 = scmp.lt.u32.totalorder %s846_s15, %s964_s4 }
  0x16   :  { %p852_p10 = pnand %p850_p9, %p847_p8 }
  0x18   :  { %855 = shalt.err (!%p852_p10)
}
  0x19   :  { %s856_s20 = scalar_lea.vmem %s37_s12, 4096  ;;  %p861_p12 = scmp.lt.s32.totalorder %s37_s12, %s37_s12 }
  0x1a   :  { %p857_p11 = scmp.ne.s32.totalorder %s37_s12, %s856_s20  ;;  %p862_p13 = scmp.lt.s32.totalorder %s856_s20, %s856_s20 }
  0x1c   :  { %p863_p0 = por %p862_p13, %p861_p12 }
  0x1e   :  { %p864_p1 = pnand %p863_p0, %p857_p11 }
  0x20   :  { %867 = shalt.err (!%p864_p1)
}
  0x21   :  { %s876_s2 = smov 64   ;;  %s877_s21 = smov 4  }
  0x22   :  { %42 = dma.hbm_to_vmem [thread:$0]  %s964_s4, 4096, %s37_s12, [#allocation5], %s876_s2, %s876_s2, %s877_s21  }
  0x23   :  { %868 = dma.done.wait [#allocation3], 2048  }
  0x24   :  { %869 = vsyncadd [#allocation3], 4294965248 }
  0x25   :  { %870 = dma.done.wait [#allocation5], 4096  }
  0x26   :  { %871 = vsyncadd [#allocation5], 4294963200  ;;  %v878_v0 = vmov 0   ;;  %v54_v1 = vld [vmem:[%s961_s1] sm:$0xff]  ;;  %v55_v2 = vld [vmem:[%s961_s1 + $0x8] sm:$0xff]  ;;  %s879_s4 = smov 32   ;;  %v86_v60 = vlaneseq }
  0x27   :  { %222 = vmatprep.mubr.bf16.mxu0 %v878_v0  ;;  %265 = vmatprep.mubr.bf16.mxu1 %v878_v0  ;;  %v763_v3 = vpack.i.bf16 %v55_v2, %v54_v1  ;;  %v768_v4 = vld [vmem:[#allocation2 + $0x4] ss:$16 sps:$4 sm:$0xff]   ;;  %v770_v5 = vld [vmem:[#allocation2 + $0xc] ss:$16 sps:$4 sm:$0xff]   ;;  %v772_v6 = vld [vmem:[#allocation2] ss:$16 sps:$4 sm:$0xff]  }
  0x28   :  { %190 = vmatprep.subr.bf16.mxu0 %v768_v4  ;;  %v773_v7 = vld [vmem:[#allocation2 + $0x8] ss:$16 sps:$4 sm:$0xff]   ;;  %233 = vmatprep.subr.bf16.mxu1 %v770_v5  ;;  %v774_v8 = vld [vmem:[#allocation2 + $0x24] ss:$16 sps:$4 sm:$0xff]   ;;  %v776_v9 = vld [vmem:[#allocation2 + $0x2c] ss:$16 sps:$4 sm:$0xff]  }
  0x29   :  { %764 = vrot.lane.b32.xlu0 %v763_v3, %s879_s4  ;;  %191 = vmatpush1.bf16.msra.mxu0 %v772_v6  ;;  %v778_v10 = vld [vmem:[#allocation2 + $0x20] ss:$16 sps:$4 sm:$0xff]   ;;  %v779_v11 = vld [vmem:[#allocation2 + $0x28] ss:$16 sps:$4 sm:$0xff]   ;;  %v780_v12 = vld [vmem:[#allocation2 + $0x44] ss:$16 sps:$4 sm:$0xff]  }
  0x2a   :  { %234 = vmatpush1.bf16.msra.mxu1 %v773_v7  ;;  %192 = vmatprep.subr.bf16.mxu0 %v774_v8  ;;  %v782_v13 = vld [vmem:[#allocation2 + $0x4c] ss:$16 sps:$4 sm:$0xff]   ;;  %v784_v14 = vld [vmem:[#allocation2 + $0x40] ss:$16 sps:$4 sm:$0xff]   ;;  %v785_v15 = vld [vmem:[#allocation2 + $0x48] ss:$16 sps:$4 sm:$0xff]  }
  0x2b   :  { %235 = vmatprep.subr.bf16.mxu1 %v776_v9  ;;  %v786_v16 = vld [vmem:[#allocation2 + $0x64] ss:$16 sps:$4 sm:$0xff]   ;;  %v788_v17 = vld [vmem:[#allocation2 + $0x6c] ss:$16 sps:$4 sm:$0xff]   ;;  %v790_v18 = vld [vmem:[#allocation2 + $0x60] ss:$16 sps:$4 sm:$0xff]  }
  0x2c   :  { %v791_v19 = vld [vmem:[#allocation2 + $0x68] ss:$16 sps:$4 sm:$0xff]   ;;  %v792_v20 = vld [vmem:[#allocation4 + $0x40] sm:$0xff]   ;;  %vm64_vm0 = vcmask 261120   ;;  %vm186_vm1 = vcmask 523264   ;;  %v800_v36 = vld [vmem:[#allocation4 + $0x50] sm:$0xff]  }
  0x2d   :  { %193 = vmatpush1.bf16.msra.mxu0 %v778_v10  ;;  %v793_v21 = vld [vmem:[#allocation4 + $0xc0] sm:$0xff]   ;;  %v53_v24 = vld [vmem:[%s960_s0 + $0x8] sm:$0xff]  ;;  %v801_v37 = vld [vmem:[#allocation4 + $0xd0] sm:$0xff]   ;;  %v87_v61 = vshrl.u32 %v86_v60, 7 }
  0x2e   :  { %236 = vmatpush1.bf16.msra.mxu1 %v779_v11  ;;  %194 = vmatprep.subr.bf16.mxu0 %v780_v12  ;;  %v52_v23 = vld [vmem:[%s960_s0] sm:$0xff]  ;;  %v796_v32 = vld [vmem:[#allocation4 + $0x48] sm:$0xff]   ;;  %v802_v38 = vld [vmem:[#allocation4 + $0x10] sm:$0xff]  }
  0x2f   :  { %237 = vmatprep.subr.bf16.mxu1 %v782_v13  ;;  %v794_v29 = vld [vmem:[#allocation4] sm:$0xff]   ;;  %v797_v33 = vld [vmem:[#allocation4 + $0xc8] sm:$0xff]   ;;  %v803_v39 = vld [vmem:[#allocation4 + $0x90] sm:$0xff]   ;;  %v88_v62 = vsub.s32 0, %v87_v61  ;;  %v96_v63 = vsub.s32 2, %v87_v61  ;;  %v92_v1 = vsub.s32 1, %v87_v61 }
  0x30   :  { %v795_v30 = vld [vmem:[#allocation4 + $0x80] sm:$0xff]   ;;  %v798_v34 = vld [vmem:[#allocation4 + $0x8] sm:$0xff]   ;;  %v804_v40 = vld [vmem:[#allocation4 + $0x58] sm:$0xff]   ;;  %v100_v2 = vsub.s32 3, %v87_v61 }
  0x31   :  { %195 = vmatpush1.bf16.msra.mxu0 %v784_v14  ;;  %v799_v35 = vld [vmem:[#allocation4 + $0x88] sm:$0xff]   ;;  %v805_v41 = vld [vmem:[#allocation4 + $0xd8] sm:$0xff]   ;;  %v808_v44 = vld [vmem:[#allocation4 + $0x60] sm:$0xff]  }
  0x32   :  { %238 = vmatpush1.bf16.msra.mxu1 %v785_v15  ;;  %196 = vmatprep.subr.bf16.mxu0 %v786_v16  ;;  %v806_v42 = vld [vmem:[#allocation4 + $0x18] sm:$0xff]   ;;  %v809_v45 = vld [vmem:[#allocation4 + $0xe0] sm:$0xff]   ;;  %v812_v48 = vld [vmem:[#allocation4 + $0x68] sm:$0xff]  }
  0x33   :  { %239 = vmatprep.subr.bf16.mxu1 %v788_v17  ;;  %v807_v43 = vld [vmem:[#allocation4 + $0x98] sm:$0xff]   ;;  %v810_v46 = vld [vmem:[#allocation4 + $0x20] sm:$0xff]   ;;  %v813_v49 = vld [vmem:[#allocation4 + $0xe8] sm:$0xff]  }
  0x34   :  { %v811_v47 = vld [vmem:[#allocation4 + $0xa0] sm:$0xff]   ;;  %v814_v50 = vld [vmem:[#allocation4 + $0x28] sm:$0xff]   ;;  %v816_v52 = vld [vmem:[#allocation4 + $0x70] sm:$0xff]  }
  0x35   :  { %197 = vmatpush1.bf16.msra.mxu0 %v790_v18  ;;  %v815_v51 = vld [vmem:[#allocation4 + $0xa8] sm:$0xff]   ;;  %v817_v53 = vld [vmem:[#allocation4 + $0xf0] sm:$0xff]   ;;  %v820_v56 = vld [vmem:[#allocation4 + $0x78] sm:$0xff]  }
  0x36   :  { %240 = vmatpush1.bf16.msra.mxu1 %v791_v19  ;;  %711 = vmatprep.subr.bf16.mxu0 %v792_v20  ;;  %v818_v54 = vld [vmem:[#allocation4 + $0x30] sm:$0xff]   ;;  %v821_v57 = vld [vmem:[#allocation4 + $0xf8] sm:$0xff]   ;;  %v84_v0 = vld [vmem:[%s963_s3] sm:$0xf] }
  0x37   :  { %733 = vmatprep.subr.bf16.mxu1 %v793_v21  ;;  %v819_v55 = vld [vmem:[#allocation4 + $0xb0] sm:$0xff]   ;;  %v822_v58 = vld [vmem:[#allocation4 + $0x38] sm:$0xff]   ;;  %v89_v3 = vrot.slane %v84_v0, %v88_v62  ;;  %v97_v4 = vrot.slane %v84_v0, %v96_v63  ;;  %v93_v5 = vrot.slane %v84_v0, %v92_v1  ;;  %v101_v6 = vrot.slane %v84_v0, %v100_v2 }
  0x38   :  { %v823_v59 = vld [vmem:[#allocation4 + $0xb8] sm:$0xff]  }
  0x9b   :  { %v765_v22 = vpop.permute.xlu0 %764 }
  0x9c   :  { %v767_v25 = vunpack.i.h.bf16 %v765_v22  ;;  %v766_v26 = vunpack.i.l.bf16 %v765_v22 }
  0x9e   :  { %v65_v27 = vsel %vm64_vm0, %v52_v23, %v766_v26  ;;  %v66_v28 = vsel %vm64_vm0, %v53_v24, %v767_v25 }
  0x9f   :  { %v67_v31 = vpack.c.bf16 %v66_v28, %v65_v27 }
  0xa1   :  { %667 = vmatmul.mubr.msk.bf16.vlgmr.msra.gmra.mrb[0].mxu0 %vm186_vm1, %v67_v31  ;;  %668 = vmatmul.mubr.msk.bf16.vlgmr.msra.gmra.mrb[0].mxu1 %vm186_vm1, %v67_v31 }
  0xa2   :  { %712 = vmatpush3.bf16.msra.mxu0 %v794_v29  ;;  %734 = vmatpush3.bf16.msra.mxu1 %v795_v30 }
  0xa3   :  { %713 = vmatprep.subr.bf16.mxu0 %v796_v32  ;;  %735 = vmatprep.subr.bf16.mxu1 %v797_v33 }
  0xa6   :  { %714 = vmatpush3.bf16.msra.mxu0 %v798_v34  ;;  %736 = vmatpush3.bf16.msra.mxu1 %v799_v35 }
  0xa7   :  { %715 = vmatprep.subr.bf16.mxu0 %v800_v36  ;;  %737 = vmatprep.subr.bf16.mxu1 %v801_v37  ;;  %v669_v37 = vld [vmem:[%s965_s5] ss:$0 sm:$0xff] }
  0xaa   :  { %716 = vmatpush3.bf16.msra.mxu0 %v802_v38  ;;  %738 = vmatpush3.bf16.msra.mxu1 %v803_v39 }
  0xab   :  { %717 = vmatprep.subr.bf16.mxu0 %v804_v40  ;;  %739 = vmatprep.subr.bf16.mxu1 %v805_v41 }
  0xae   :  { %718 = vmatpush3.bf16.msra.mxu0 %v806_v42  ;;  %740 = vmatpush3.bf16.msra.mxu1 %v807_v43 }
  0xaf   :  { %719 = vmatprep.subr.bf16.mxu0 %v808_v44  ;;  %741 = vmatprep.subr.bf16.mxu1 %v809_v45 }
  0xb2   :  { %720 = vmatpush3.bf16.msra.mxu0 %v810_v46  ;;  %742 = vmatpush3.bf16.msra.mxu1 %v811_v47 }
  0xb3   :  { %721 = vmatprep.subr.bf16.mxu0 %v812_v48  ;;  %743 = vmatprep.subr.bf16.mxu1 %v813_v49 }
  0xb6   :  { %722 = vmatpush3.bf16.msra.mxu0 %v814_v50  ;;  %744 = vmatpush3.bf16.msra.mxu1 %v815_v51 }
  0xb7   :  { %723 = vmatprep.subr.bf16.mxu0 %v816_v52  ;;  %745 = vmatprep.subr.bf16.mxu1 %v817_v53 }
  0xba   :  { %724 = vmatpush3.bf16.msra.mxu0 %v818_v54  ;;  %746 = vmatpush3.bf16.msra.mxu1 %v819_v55 }
  0xbb   :  { %725 = vmatprep.subr.bf16.mxu0 %v820_v56  ;;  %747 = vmatprep.subr.bf16.mxu1 %v821_v57 }
  0xbe   :  { %726 = vmatpush3.bf16.msra.mxu0 %v822_v58  ;;  %748 = vmatpush3.bf16.msra.mxu1 %v823_v59 }
 0x174   :  { %v224_v7 = vpop.f32.mrb[0].mxu0  ;;  %v267_v8 = vpop.f32.mrb[0].mxu1 }
 0x175   :  { %v225_v9 = vadd.f32 %v224_v7, %v89_v3  ;;  %v268_v10 = vadd.f32 %v267_v8, %v97_v4  ;;  %v226_v11 = vpop.f32.mrb[1].mxu0  ;;  %v269_v12 = vpop.f32.mrb[1].mxu1 }
 0x176   :  { %v227_v13 = vadd.f32 %v226_v11, %v93_v5  ;;  %v270_v14 = vadd.f32 %v269_v12, %v101_v6  ;;  %v228_v15 = vpop.f32.mrb[2].mxu0  ;;  %v271_v16 = vpop.f32.mrb[2].mxu1 }
 0x177   :  { %v229_v17 = vadd.f32 %v228_v15, %v89_v3  ;;  %v272_v18 = vadd.f32 %v271_v16, %v97_v4  ;;  %v230_v19 = vpop.f32.mrb[3].mxu0  ;;  %v273_v20 = vpop.f32.mrb[3].mxu1  ;;  %v276_v23 = vmax.f32 %v225_v9, 0.0  ;;  %v278_v24 = vmax.f32 %v268_v10, 0.0 }
 0x178   :  { %v231_v21 = vadd.f32 %v230_v19, %v93_v5  ;;  %v274_v22 = vadd.f32 %v273_v20, %v101_v6  ;;  %v277_v27 = vmax.f32 %v227_v13, 0.0  ;;  %v279_v28 = vmax.f32 %v270_v14, 0.0 }
 0x179   :  { %v280_v25 = vmax.f32 %v229_v17, 0.0  ;;  %v282_v26 = vmax.f32 %v272_v18, 0.0 }
 0x17a   :  { %v281_v29 = vmax.f32 %v231_v21, 0.0  ;;  %v283_v30 = vmax.f32 %v274_v22, 0.0 }
 0x17b   :  { %v284_v31 = vpack.c.bf16 %v280_v25, %v276_v23  ;;  %v286_v32 = vpack.c.bf16 %v282_v26, %v278_v24 }
 0x17c   :  { %v285_v33 = vpack.c.bf16 %v281_v29, %v277_v27  ;;  %v287_v34 = vpack.c.bf16 %v283_v30, %v279_v28 }
 0x17e   :  { %583 = vmatprep.mubr.bf16.mxu0 %v285_v33  ;;  %624 = vmatprep.mubr.bf16.mxu1 %v287_v34 }
 0x17f   :  { %584 = vmatmul.mubr.bf16.vlgmr.msra.gmra.mrb[4].mxu0 %v284_v31  ;;  %625 = vmatmul.mubr.bf16.vlgmr.msra.gmra.mrb[4].mxu1 %v286_v32 }
 0x252   :  { %v727_v35 = vpop.f32.mrb[4].mxu0  ;;  %v749_v36 = vpop.f32.mrb[4].mxu1 }
 0x253   :  { %v728_v38 = vpop.f32.mrb[5].mxu0  ;;  %v750_v39 = vpop.f32.mrb[5].mxu1 }
 0x254   :  { %v729_v40 = vadd.f32 %v728_v38, %v727_v35  ;;  %v751_v41 = vadd.f32 %v750_v39, %v749_v36  ;;  %v730_v42 = vpop.f32.mrb[6].mxu0  ;;  %v752_v43 = vpop.f32.mrb[6].mxu1 }
 0x255   :  { %v731_v44 = vpop.f32.mrb[7].mxu0  ;;  %v753_v45 = vpop.f32.mrb[7].mxu1 }
 0x256   :  { %v586_v46 = vadd.f32 %v729_v40, %v669_v37  ;;  %v732_v47 = vadd.f32 %v731_v44, %v730_v42  ;;  %v754_v48 = vadd.f32 %v753_v45, %v752_v43 }
 0x258   :  { %v627_v49 = vadd.f32 %v751_v41, %v586_v46  ;;  %v589_v50 = vadd.f32 %v732_v47, %v669_v37 }
 0x25a   :  { %v630_v51 = vadd.f32 %v754_v48, %v589_v50  ;;  %v633_v52 = vmax.f32 %v627_v49, 0.0 }
 0x25c   :  { %v634_v53 = vmax.f32 %v630_v51, 0.0 }
 0x25e   :  { %v709_v54 = vpack.c.bf16 %v634_v53, %v633_v52 }
 0x260   :  { %710 = vst [vmem:[%s966_s6] sm:$0xff] %v709_v54  }
 0x261   :  { %649 = vsyncpa [#allocation3], 1 }
 0x262   :  { %650 = vsyncpa [#allocation5], 1 }

</bundles_post_ra>
